<compile_context>
chip_gen: v7x
topology: tpu7x:2x2x1
jax: 0.10.0
libtpu: 0.0.40
codegen_flags: <defaults>
</compile_context>

<pallas_src>
import jax
import jax.numpy as jnp
import numpy as np
from jax.experimental import pallas as pl
from jax.experimental.pallas import tpu as pltpu

LANE = 128


def _round_up(x, m):
    return ((x + m - 1) // m) * m


# ----------------------------------------------------------------------------
# Pallas kernel: one TILE_B batch tile; all weights/biases VMEM-resident across the grid.
# ----------------------------------------------------------------------------
def _critic_kernel(state_ref, act_ref, w1s_ref, w1a_ref, b1_ref,
                   w2_ref, b2_ref, w3_ref, b3_ref, q_ref):
    wdt = w1s_ref.dtype
    s = state_ref[...]                                   # (TB, n_state)  already compute dtype
    a = act_ref[...]                                     # (TB, n_actions)
    # Fused concat: [s | a] @ w1 == s @ w1[:n_state] + a @ w1[n_state:]
    h1 = (jnp.dot(s, w1s_ref[...], preferred_element_type=jnp.float32)
          + jnp.dot(a, w1a_ref[...], preferred_element_type=jnp.float32)
          + b1_ref[...])
    h1 = jnp.maximum(h1, 0.0)                            # f32 epilogue (VPU-native on v5e)
    h2 = jnp.dot(h1.astype(wdt), w2_ref[...],
                 preferred_element_type=jnp.float32) + b2_ref[...]
    h2 = jnp.maximum(h2, 0.0)
    # Final layer: unpadded n_out columns + bias, stored directly (masked vst is noise
    # next to the two (TILE_B x Fp x Fp) matmuls; avoids 128x writeback inflation).
    q = jnp.dot(h2.astype(wdt), w3_ref[...],
                preferred_element_type=jnp.float32) + b3_ref[...]
    q_ref[...] = q.astype(q_ref.dtype)


# ----------------------------------------------------------------------------
# One-time param prep: pad the hidden dim to a 128-multiple (zeros => identical math),
# split w1 at the state/action boundary, keep biases f32, pad w3 on K only.
# compute_dtype=jnp.bfloat16 gives the bf16 MXU path on v5e/v6e/v7x (f32 accumulation).
# ----------------------------------------------------------------------------
def prepare_params(params, n_state, compute_dtype=jnp.float32):
    w1, b1 = params["w1"], params["b1"]
    w2, b2 = params["w2"], params["b2"]
    w3, b3 = params["w3"], params["b3"]
    n_in, F = w1.shape
    n_out = w3.shape[1]
    Fp = _round_up(F, LANE)

    def pad2(x, r, c, dtype):
        out = jnp.zeros((r, c), dtype)
        return out.at[: x.shape[0], : x.shape[1]].set(x.astype(dtype))

    w1p = pad2(w1, n_in, Fp, compute_dtype)
    return {
        "w1s": w1p[:n_state],                                   # (n_state,   Fp)
        "w1a": w1p[n_state:],                                   # (n_actions, Fp)
        "b1": pad2(b1.reshape(1, -1), 1, Fp, jnp.float32),      # (1, Fp)
        "w2": pad2(w2, Fp, Fp, compute_dtype),                  # (Fp, Fp)
        "b2": pad2(b2.reshape(1, -1), 1, Fp, jnp.float32),      # (1, Fp)
        "w3": pad2(w3, Fp, n_out, compute_dtype),               # (Fp, n_out) -- K padded only
        "b3": jnp.asarray(b3, jnp.float32).reshape(1, n_out),   # (1, n_out)  -- fused in kernel
    }


# ----------------------------------------------------------------------------
# Forward: state (..., n_state), actions (..., n_actions) -> torch.squeeze(q)
# ----------------------------------------------------------------------------
@jax.jit
def maddpg_critic_forward(state, actions, prepped):
    n_state = prepped["w1s"].shape[0]
    n_act = prepped["w1a"].shape[0]
    Fp = prepped["w2"].shape[0]
    n_out = prepped["w3"].shape[1]
    cdt = prepped["w1s"].dtype

    lead = state.shape[:-1]
    # Cast to compute dtype in the wrapper (halves input HBM bytes when bf16).
    s2 = state.reshape(-1, n_state).astype(cdt)
    a2 = actions.reshape(-1, n_act).astype(cdt)
    B = s2.shape[0]

    # Large tiles amortize per-grid-step overhead; cap at ~ceil(B/2) so moderate B still
    # yields >=2 parallel grid steps (v7x: both TensorCores get work).
    TILE_B = _round_up(max(pl.cdiv(B, 2), 1), 8)
    TILE_B = max(8, min(4096, TILE_B))
    grid = (pl.cdiv(B, TILE_B),)

    def row_spec(feat):
        return pl.BlockSpec((TILE_B, feat), lambda i: (i, 0))

    def full_spec(arr):
        return pl.BlockSpec(arr.shape, lambda i: (0, 0))        # weights resident across grid

    itemsize = jnp.dtype(cdt).itemsize
    weight_bytes = sum(
        int(np.prod(prepped[k].shape)) * jnp.dtype(prepped[k].dtype).itemsize
        for k in ("w1s", "w1a", "b1", "w2", "b2", "w3", "b3"))
    cost = pl.CostEstimate(
        flops=2 * B * ((n_state + n_act) * Fp + Fp * Fp + Fp * n_out),
        transcendentals=0,
        bytes_accessed=B * (n_state + n_act) * itemsize + B * n_out * 4 + weight_bytes,
    )

    q = pl.pallas_call(
        _critic_kernel,
        grid=grid,
        in_specs=[
            row_spec(n_state),
            row_spec(n_act),
            full_spec(prepped["w1s"]),
            full_spec(prepped["w1a"]),
            full_spec(prepped["b1"]),
            full_spec(prepped["w2"]),
            full_spec(prepped["b2"]),
            full_spec(prepped["w3"]),
            full_spec(prepped["b3"]),
        ],
        out_specs=pl.BlockSpec((TILE_B, n_out), lambda i: (i, 0)),
        out_shape=jax.ShapeDtypeStruct((B, n_out), jnp.float32),
        compiler_params=pltpu.CompilerParams(
            dimension_semantics=("parallel",),    # shard batch tiles over TCs on v7x
            vmem_limit_bytes=32 * 1024 * 1024,    # explicit budget (v7x: 64 MiB physical)
        ),
        cost_estimate=cost,
    )(s2, a2, prepped["w1s"], prepped["w1a"], prepped["b1"],
      prepped["w2"], prepped["b2"], prepped["w3"], prepped["b3"])

    q = q.reshape(lead + (n_out,))
    return jnp.squeeze(q)                          # torch.squeeze: drops all size-1 dims


# ----------------------------------------------------------------------------
# Deterministic parameter init (mirrors PyTorch __init__):
#   xavier_uniform_ with relu gain for h1/h2, linear gain for h3;
#   biases use PyTorch Linear default: U(-1/sqrt(fan_in), 1/sqrt(fan_in)).
# ----------------------------------------------------------------------------
def init_params(key, n_input, n_features, n_output):
    def xavier_uniform(k, fan_in, fan_out, gain):
        bound = gain * np.sqrt(6.0 / (fan_in + fan_out))
        return jax.random.uniform(k, (fan_in, fan_out), jnp.float32, -bound, bound)

    def bias_uniform(k, fan_in, fan_out):
        bound = 1.0 / np.sqrt(fan_in)
        return jax.random.uniform(k, (1, fan_out), jnp.float32, -bound, bound)

    ks = jax.random.split(key, 6)
    relu_gain = float(np.sqrt(2.0))
    linear_gain = 1.0
    return {
        "w1": xavier_uniform(ks[0], n_input, n_features, relu_gain),
        "b1": bias_uniform(ks[1], n_input, n_features),
        "w2": xavier_uniform(ks[2], n_features, n_features, relu_gain),
        "b2": bias_uniform(ks[3], n_features, n_features),
        "w3": xavier_uniform(ks[4], n_features, n_output, linear_gain),
        "b3": bias_uniform(ks[5], n_features, n_output),
    }


if __name__ == "__main__":
    key = jax.random.PRNGKey(0)
    k_state, k_act, k_params = jax.random.split(key, 3)

    # Small shapes consistent with the module's forward.
    B, n_state, n_actions, n_features, n_output = 8, 6, 4, 32, 1
    n_input = n_state + n_actions

    state = jax.random.normal(k_state, (B, n_state), jnp.float32)
    actions = jax.random.normal(k_act, (B, n_actions), jnp.float32)
    params = init_params(k_params, n_input, n_features, n_output)

    # f32 keeps exact parity with the module for the assert below; compute_dtype=jnp.bfloat16
    # is the fast MXU path on v5e/v6e/v7x (f32 accumulation, f32 epilogue) when ~1e-2
    # tolerance is acceptable.
    prepped = prepare_params(params, n_state, compute_dtype=jnp.float32)

    q = maddpg_critic_forward(state, actions, prepped)
    q = jax.block_until_ready(q)

    # Plain-JAX reference (same math as the PyTorch module).
    sa = jnp.concatenate([state, actions], axis=-1)
    h1 = jnp.maximum(sa @ params["w1"] + params["b1"], 0.0)
    h2 = jnp.maximum(h1 @ params["w2"] + params["b2"], 0.0)
    q_ref = jnp.squeeze(h2 @ params["w3"] + params["b3"])

    assert q.shape == (B,), q.shape
    np.testing.assert_allclose(np.asarray(q), np.asarray(q_ref), rtol=1e-5, atol=1e-5)

    print("KERNEL_OK")
</pallas_src>

<mosaic_0001>
module attributes {stable_mosaic.version = 11 : i64} {
  func.func @_critic_kernel(%arg0: i32, %arg1: memref<8x6xf32, #tpu.memory_space<vmem>>, %arg2: memref<8x4xf32, #tpu.memory_space<vmem>>, %arg3: memref<6x128xf32, #tpu.memory_space<vmem>>, %arg4: memref<4x128xf32, #tpu.memory_space<vmem>>, %arg5: memref<1x128xf32, #tpu.memory_space<vmem>>, %arg6: memref<128x128xf32, #tpu.memory_space<vmem>>, %arg7: memref<1x128xf32, #tpu.memory_space<vmem>>, %arg8: memref<128x1xf32, #tpu.memory_space<vmem>>, %arg9: memref<1x1xf32, #tpu.memory_space<vmem>>, %arg10: memref<8x1xf32, #tpu.memory_space<vmem>>) attributes {dimension_semantics = [#tpu.dimension_semantics<parallel>], iteration_bounds = array<i64: 1>, scalar_prefetch = 0 : i64, scratch_operands = 0 : i64, tpu.core_type = #tpu.core_type<tc>, window_params = [{transform_indices = @transform_0, window_bounds = array<i64: 8, 6>}, {transform_indices = @transform_1, window_bounds = array<i64: 8, 4>}, {pipeline_mode = #tpu.pipeline_mode<synchronous>, transform_indices = @transform_2, window_bounds = array<i64: 6, 128>}, {pipeline_mode = #tpu.pipeline_mode<synchronous>, transform_indices = @transform_3, window_bounds = array<i64: 4, 128>}, {pipeline_mode = #tpu.pipeline_mode<synchronous>, transform_indices = @transform_4, window_bounds = array<i64: 1, 128>}, {pipeline_mode = #tpu.pipeline_mode<synchronous>, transform_indices = @transform_5, window_bounds = array<i64: 128, 128>}, {pipeline_mode = #tpu.pipeline_mode<synchronous>, transform_indices = @transform_6, window_bounds = array<i64: 1, 128>}, {pipeline_mode = #tpu.pipeline_mode<synchronous>, transform_indices = @transform_7, window_bounds = array<i64: 128, 1>}, {pipeline_mode = #tpu.pipeline_mode<synchronous>, transform_indices = @transform_8, window_bounds = array<i64: 1, 1>}, {transform_indices = @transform_9, window_bounds = array<i64: 8, 1>}]} {
    %c0 = arith.constant 0 : index
    %c0_0 = arith.constant 0 : index
    %0 = vector.load %arg1[%c0, %c0_0] : memref<8x6xf32, #tpu.memory_space<vmem>>, vector<8x6xf32>
    %c0_1 = arith.constant 0 : index
    %c0_2 = arith.constant 0 : index
    %1 = vector.load %arg2[%c0_1, %c0_2] : memref<8x4xf32, #tpu.memory_space<vmem>>, vector<8x4xf32>
    %c0_3 = arith.constant 0 : index
    %c0_4 = arith.constant 0 : index
    %2 = vector.load %arg3[%c0_3, %c0_4] : memref<6x128xf32, #tpu.memory_space<vmem>>, vector<6x128xf32>
    %cst = arith.constant dense<0.000000e+00> : vector<8x128xf32>
    %3 = tpu.matmul %0, %2, %cst {dimension_numbers = #tpu.dot_dimension_numbers<[1], [0], [0], [1], [0, 0, 1, 1], [], []>} : vector<8x6xf32>, vector<6x128xf32>, vector<8x128xf32> -> vector<8x128xf32>
    %c0_5 = arith.constant 0 : index
    %c0_6 = arith.constant 0 : index
    %4 = vector.load %arg4[%c0_5, %c0_6] : memref<4x128xf32, #tpu.memory_space<vmem>>, vector<4x128xf32>
    %cst_7 = arith.constant dense<0.000000e+00> : vector<8x128xf32>
    %5 = tpu.matmul %1, %4, %cst_7 {dimension_numbers = #tpu.dot_dimension_numbers<[1], [0], [0], [1], [0, 0, 1, 1], [], []>} : vector<8x4xf32>, vector<4x128xf32>, vector<8x128xf32> -> vector<8x128xf32>
    %6 = arith.addf %3, %5 : vector<8x128xf32>
    %c0_8 = arith.constant 0 : index
    %c0_9 = arith.constant 0 : index
    %7 = vector.load %arg5[%c0_8, %c0_9] : memref<1x128xf32, #tpu.memory_space<vmem>>, vector<1x128xf32>
    %8 = vector.broadcast %7 : vector<1x128xf32> to vector<8x128xf32>
    %9 = arith.addf %6, %8 : vector<8x128xf32>
    %cst_10 = arith.constant 0.000000e+00 : f32
    %10 = vector.broadcast %cst_10 : f32 to vector<8x128xf32>
    %11 = arith.maximumf %9, %10 : vector<8x128xf32>
    %c0_11 = arith.constant 0 : index
    %c0_12 = arith.constant 0 : index
    %12 = vector.load %arg6[%c0_11, %c0_12] : memref<128x128xf32, #tpu.memory_space<vmem>>, vector<128x128xf32>
    %cst_13 = arith.constant dense<0.000000e+00> : vector<8x128xf32>
    %13 = tpu.matmul %11, %12, %cst_13 {dimension_numbers = #tpu.dot_dimension_numbers<[1], [0], [0], [1], [0, 0, 1, 1], [], []>} : vector<8x128xf32>, vector<128x128xf32>, vector<8x128xf32> -> vector<8x128xf32>
    %c0_14 = arith.constant 0 : index
    %c0_15 = arith.constant 0 : index
    %14 = vector.load %arg7[%c0_14, %c0_15] : memref<1x128xf32, #tpu.memory_space<vmem>>, vector<1x128xf32>
    %15 = vector.broadcast %14 : vector<1x128xf32> to vector<8x128xf32>
    %16 = arith.addf %13, %15 : vector<8x128xf32>
    %cst_16 = arith.constant 0.000000e+00 : f32
    %17 = vector.broadcast %cst_16 : f32 to vector<8x128xf32>
    %18 = arith.maximumf %16, %17 : vector<8x128xf32>
    %c0_17 = arith.constant 0 : index
    %c0_18 = arith.constant 0 : index
    %19 = vector.load %arg8[%c0_17, %c0_18] : memref<128x1xf32, #tpu.memory_space<vmem>>, vector<128x1xf32>
    %cst_19 = arith.constant dense<0.000000e+00> : vector<8x1xf32>
    %20 = tpu.matmul %18, %19, %cst_19 {dimension_numbers = #tpu.dot_dimension_numbers<[1], [0], [0], [1], [0, 0, 1, 1], [], []>} : vector<8x128xf32>, vector<128x1xf32>, vector<8x1xf32> -> vector<8x1xf32>
    %c0_20 = arith.constant 0 : index
    %c0_21 = arith.constant 0 : index
    %21 = vector.load %arg9[%c0_20, %c0_21] : memref<1x1xf32, #tpu.memory_space<vmem>>, vector<1x1xf32>
    %22 = vector.broadcast %21 : vector<1x1xf32> to vector<8x1xf32>
    %23 = arith.addf %20, %22 : vector<8x1xf32>
    %c0_22 = arith.constant 0 : index
    %c0_23 = arith.constant 0 : index
    %24 = vector.load %arg10[%c0_22, %c0_23] : memref<8x1xf32, #tpu.memory_space<vmem>>, vector<8x1xf32>
    tpu.vector_store %arg10[%c0_22, %c0_23], %23 {strides = array<i32>} : memref<8x1xf32, #tpu.memory_space<vmem>>, vector<8x1xf32>,
    return
  }
  func.func @transform_0(%arg0: i32) -> (i32, i32) {
    %c0_i32 = arith.constant 0 : i32
    %c0_i32_0 = arith.constant 0 : i32
    return %arg0, %c0_i32 : i32, i32
  }
  func.func @transform_1(%arg0: i32) -> (i32, i32) {
    %c0_i32 = arith.constant 0 : i32
    %c0_i32_0 = arith.constant 0 : i32
    return %arg0, %c0_i32 : i32, i32
  }
  func.func @transform_2(%arg0: i32) -> (i32, i32) {
    %c0_i32 = arith.constant 0 : i32
    %c0_i32_0 = arith.constant 0 : i32
    %c0_i32_1 = arith.constant 0 : i32
    return %c0_i32, %c0_i32_0 : i32, i32
  }
  func.func @transform_3(%arg0: i32) -> (i32, i32) {
    %c0_i32 = arith.constant 0 : i32
    %c0_i32_0 = arith.constant 0 : i32
    %c0_i32_1 = arith.constant 0 : i32
    return %c0_i32, %c0_i32_0 : i32, i32
  }
  func.func @transform_4(%arg0: i32) -> (i32, i32) {
    %c0_i32 = arith.constant 0 : i32
    %c0_i32_0 = arith.constant 0 : i32
    %c0_i32_1 = arith.constant 0 : i32
    return %c0_i32, %c0_i32_0 : i32, i32
  }
  func.func @transform_5(%arg0: i32) -> (i32, i32) {
    %c0_i32 = arith.constant 0 : i32
    %c0_i32_0 = arith.constant 0 : i32
    %c0_i32_1 = arith.constant 0 : i32
    return %c0_i32, %c0_i32_0 : i32, i32
  }
  func.func @transform_6(%arg0: i32) -> (i32, i32) {
    %c0_i32 = arith.constant 0 : i32
    %c0_i32_0 = arith.constant 0 : i32
    %c0_i32_1 = arith.constant 0 : i32
    return %c0_i32, %c0_i32_0 : i32, i32
  }
  func.func @transform_7(%arg0: i32) -> (i32, i32) {
    %c0_i32 = arith.constant 0 : i32
    %c0_i32_0 = arith.constant 0 : i32
    %c0_i32_1 = arith.constant 0 : i32
    return %c0_i32, %c0_i32_0 : i32, i32
  }
  func.func @transform_8(%arg0: i32) -> (i32, i32) {
    %c0_i32 = arith.constant 0 : i32
    %c0_i32_0 = arith.constant 0 : i32
    %c0_i32_1 = arith.constant 0 : i32
    return %c0_i32, %c0_i32_0 : i32, i32
  }
  func.func @transform_9(%arg0: i32) -> (i32, i32) {
    %c0_i32 = arith.constant 0 : i32
    %c0_i32_0 = arith.constant 0 : i32
    return %arg0, %c0_i32 : i32, i32
  }
}

</mosaic_0001>

<bundles_post_ra>
// kernel: maddpg_critic_forward.1
= control target key start
LH: loop header
LB: loop body
LE: loop exit
PB: predicated region body
PF: predicated region fallthrough
CT: control target
= control target key end

     0   :  { %vm42_vm0 = vcmask 1043456   ;;  %vm120_vm1 = vcmask 1045504   ;;  %v572_v0 = vmov 0.0   ;;  %vm38_vm2 = vcmask 31744   ;;  %s766_s3 = inlined_call_operand.vmem [shape: f32[4,128], index: 3, kind: input, shape index: {}]   ;;  %s767_s2 = inlined_call_operand.vmem [shape: f32[6,128], index: 2, kind: input, shape index: {}]   ;;  %s768_s1 = inlined_call_operand.vmem [shape: f32[8,4], index: 1, kind: input, shape index: {}]   ;;  %s769_s0 = inlined_call_operand.vmem [shape: f32[8,6], index: 0, kind: input, shape index: {}]   ;;  %s770_s5 = inlined_call_operand.vmem [shape: f32[128,128], index: 5, kind: input, shape index: {}]   ;;  %s771_s7 = inlined_call_operand.vmem [shape: f32[128,1], index: 7, kind: input, shape index: {}]   ;;  %s772_s4 = inlined_call_operand.vmem [shape: f32[1,128], index: 4, kind: input, shape index: {}]   ;;  %s773_s8 = inlined_call_operand.<no memory space> [shape: f32[1,1], index: 8, kind: input, shape index: {}]   ;;  %s774_s6 = inlined_call_operand.vmem [shape: f32[1,128], index: 6, kind: input, shape index: {}]   ;;  %s775_s9 = inlined_call_operand.vmem [shape: f32[8,1], index: 9, kind: output, shape index: {}]  }
   0x1   :  { %441 = vmatprep.subr.mxu0 %v572_v0  ;;  %446 = vmatprep.subr.mxu1 %v572_v0  ;;  %v37_v1 = vld [vmem:[%s766_s3] sm:$0xf]  ;;  %vm573_vm3 = vmmov 0   ;;  %vm116_vm4 = vcmask 48128   ;;  %v204_v6 = vld [vmem:[%s770_s5 + $0x8] sm:$0xff]  ;;  %v205_v8 = vld [vmem:[%s770_s5 + $0x10] sm:$0xff]  ;;  %v14_v62 = vstv %s773_s8 }
   0x2   :  { %v36_v2 = vld [vmem:[%s767_s2] sm:$0x3f]  ;;  %442 = vmatpush3.msk.msra.mxu0 %vm42_vm0, %v37_v1  ;;  %443 = vmatprep.mubr.msk.f32.mxu0 %vm573_vm3, %v572_v0  ;;  %v206_v9 = vld [vmem:[%s770_s5 + $0x18] sm:$0xff]  ;;  %v574_v10 = vmov 0.0|0.0   ;;  %v208_v13 = vld [vmem:[%s770_s5 + $0x28] sm:$0xff]  ;;  %vm390_vm5 = vcmask 7168  }
   0x3   :  { %v35_v3 = vld [vmem:[%s768_s1] sm:$0xff]  ;;  %447 = vmatpush3.msk.msra.mxu1 %vm120_vm1, %v36_v2  ;;  %448 = vmatprep.mubr.msk.f32.mxu1 %vm573_vm3, %v572_v0  ;;  %v525_v11 = vpack.c.bf16 %v206_v9, %v205_v8  ;;  %v209_v15 = vld [vmem:[%s770_s5 + $0x30] sm:$0xff]  ;;  %v210_v16 = vld [vmem:[%s770_s5 + $0x38] sm:$0xff]  ;;  %15 = vst [vmem:[#allocation2] sm:$0x1] %v14_v62 }
   0x4   :  { %v34_v4 = vld [vmem:[%s769_s0] sm:$0xff]  ;;  %444 = vmatmul.mubr.msk.f32.vlgmr.msra.gmra.mrb[0].mxu0 %vm38_vm2, %v35_v3  ;;  %521 = vmatprep.subr.bf16.mxu0 %v574_v10  ;;  %v531_v17 = vpack.c.bf16 %v210_v16, %v209_v15  ;;  %v212_v19 = vld [vmem:[%s770_s5 + $0x48] sm:$0xff]  ;;  %v213_v21 = vld [vmem:[%s770_s5 + $0x50] sm:$0xff] }
   0x5   :  { %v203_v5 = vld [vmem:[%s770_s5] sm:$0xff]  ;;  %449 = vmatmul.mubr.msk.f32.vlgmr.msra.gmra.mrb[0].mxu1 %vm116_vm4, %v34_v4  ;;  %483 = vmatprep.mubr.msk.f32.mxu0 %vm573_vm3, %v572_v0  ;;  %v214_v22 = vld [vmem:[%s770_s5 + $0x58] sm:$0xff]  ;;  %v216_v25 = vld [vmem:[%s770_s5 + $0x68] sm:$0xff] }
   0x6   :  { %v522_v7 = vpack.c.bf16 %v204_v6, %v203_v5  ;;  %545 = vmatprep.subr.bf16.mxu1 %v574_v10  ;;  %v207_v12 = vld [vmem:[%s770_s5 + $0x20] sm:$0xff]  ;;  %518 = vmatprep.mubr.msk.f32.mxu1 %vm573_vm3, %v572_v0  ;;  %v537_v23 = vpack.c.bf16 %v214_v22, %v213_v21  ;;  %v217_v27 = vld [vmem:[%s770_s5 + $0x70] sm:$0xff]  ;;  %v218_v28 = vld [vmem:[%s770_s5 + $0x78] sm:$0xff] }
   0x7   :  { %v528_v14 = vpack.c.bf16 %v208_v13, %v207_v12  ;;  %v211_v18 = vld [vmem:[%s770_s5 + $0x40] sm:$0xff]  ;;  %v543_v29 = vpack.c.bf16 %v218_v28, %v217_v27  ;;  %v298_v31 = vld [vmem:[%s771_s7 + $0x8] sm:$0xff]  ;;  %v299_v32 = vld [vmem:[%s771_s7 + $0x10] sm:$0xff] }
   0x8   :  { %523 = vmatpush3.bf16.msra.mxu0 %v522_v7  ;;  %v534_v20 = vpack.c.bf16 %v212_v19, %v211_v18  ;;  %v215_v24 = vld [vmem:[%s770_s5 + $0x60] sm:$0xff]  ;;  %v300_v34 = vld [vmem:[%s771_s7 + $0x18] sm:$0xff]  ;;  %v302_v37 = vld [vmem:[%s771_s7 + $0x28] sm:$0xff] }
   0x9   :  { %524 = vmatprep.subr.bf16.mxu0 %v574_v10  ;;  %v540_v26 = vpack.c.bf16 %v216_v25, %v215_v24  ;;  %v297_v30 = vld [vmem:[%s771_s7] sm:$0xff]  ;;  %v549_v35 = vpack.c.bf16 %v300_v34, %v299_v32  ;;  %v303_v39 = vld [vmem:[%s771_s7 + $0x30] sm:$0xff]  ;;  %v304_v40 = vld [vmem:[%s771_s7 + $0x38] sm:$0xff] }
   0xa   :  { %v546_v33 = vpack.c.bf16 %v298_v31, %v297_v30  ;;  %v301_v36 = vld [vmem:[%s771_s7 + $0x20] sm:$0xff]  ;;  %v555_v41 = vpack.c.bf16 %v304_v40, %v303_v39  ;;  %v306_v43 = vld [vmem:[%s771_s7 + $0x48] sm:$0xff]  ;;  %v307_v45 = vld [vmem:[%s771_s7 + $0x50] sm:$0xff] }
   0xb   :  { %v552_v38 = vpack.c.bf16 %v302_v37, %v301_v36  ;;  %v305_v42 = vld [vmem:[%s771_s7 + $0x40] sm:$0xff]  ;;  %v308_v46 = vld [vmem:[%s771_s7 + $0x58] sm:$0xff]  ;;  %v310_v49 = vld [vmem:[%s771_s7 + $0x68] sm:$0xff] }
   0xc   :  { %526 = vmatpush3.bf16.msra.mxu0 %v525_v11  ;;  %547 = vmatpush3.bf16.msra.mxu1 %v546_v33  ;;  %v558_v44 = vpack.c.bf16 %v306_v43, %v305_v42  ;;  %v561_v47 = vpack.c.bf16 %v308_v46, %v307_v45  ;;  %v309_v48 = vld [vmem:[%s771_s7 + $0x60] sm:$0xff]  ;;  %v311_v59 = vld [vmem:[%s771_s7 + $0x70] sm:$0xff]  ;;  %v312_v60 = vld [vmem:[%s771_s7 + $0x78] sm:$0xff] }
   0xd   :  { %527 = vmatprep.subr.bf16.mxu0 %v574_v10  ;;  %548 = vmatprep.subr.bf16.mxu1 %v574_v10  ;;  %v564_v50 = vpack.c.bf16 %v310_v49, %v309_v48  ;;  %v400_v53 = vld [vmem:[%s772_s4] ss:$0 sm:$0xff]  ;;  %v567_v61 = vpack.c.bf16 %v312_v60, %v311_v59 }
   0xe   :  { %v401_v63 = vld [vmem:[%s774_s6] ss:$0 sm:$0xff] }
   0xf   :  { %v402_v4 = vld [vmem:[#allocation2] ss:$0 sm:$0xff] }
  0x10   :  { %529 = vmatpush3.bf16.msra.mxu0 %v528_v14  ;;  %550 = vmatpush3.bf16.msra.mxu1 %v549_v35 }
  0x11   :  { %530 = vmatprep.subr.bf16.mxu0 %v574_v10  ;;  %551 = vmatprep.subr.bf16.mxu1 %v574_v10 }
  0x14   :  { %532 = vmatpush3.bf16.msra.mxu0 %v531_v17  ;;  %553 = vmatpush3.bf16.msra.mxu1 %v552_v38 }
  0x15   :  { %533 = vmatprep.subr.bf16.mxu0 %v574_v10  ;;  %554 = vmatprep.subr.bf16.mxu1 %v574_v10 }
  0x18   :  { %535 = vmatpush3.bf16.msra.mxu0 %v534_v20  ;;  %556 = vmatpush3.bf16.msra.mxu1 %v555_v41 }
  0x19   :  { %536 = vmatprep.subr.bf16.mxu0 %v574_v10  ;;  %557 = vmatprep.subr.bf16.mxu1 %v574_v10 }
  0x1c   :  { %538 = vmatpush3.bf16.msra.mxu0 %v537_v23  ;;  %559 = vmatpush3.bf16.msra.mxu1 %v558_v44 }
  0x1d   :  { %539 = vmatprep.subr.bf16.mxu0 %v574_v10  ;;  %560 = vmatprep.subr.bf16.mxu1 %v574_v10 }
  0x20   :  { %541 = vmatpush3.bf16.msra.mxu0 %v540_v26  ;;  %562 = vmatpush3.bf16.msra.mxu1 %v561_v47 }
  0x21   :  { %542 = vmatprep.subr.bf16.mxu0 %v574_v10  ;;  %563 = vmatprep.subr.bf16.mxu1 %v574_v10 }
  0x24   :  { %544 = vmatpush3.bf16.msra.mxu0 %v543_v29  ;;  %565 = vmatpush3.bf16.msra.mxu1 %v564_v50 }
  0x25   :  { %566 = vmatprep.subr.bf16.mxu1 %v574_v10 }
  0x28   :  { %568 = vmatpush3.bf16.msra.mxu1 %v567_v61 }
  0xd7   :  { %v112_v51 = vpop.f32.mrb[0].mxu0 }
  0xd8   :  { %v190_v52 = vpop.f32.mrb[0].mxu1  ;;  %v445_v55 = vpop.f32.mrb[1].mxu0 }
  0xd9   :  { %v191_v54 = vadd.f32 %v190_v52, %v112_v51  ;;  %v450_v56 = vpop.f32.mrb[1].mxu1 }
  0xdb   :  { %v201_v57 = vadd.f32 %v400_v53, %v191_v54 }
  0xdd   :  { %v202_v58 = vmax.f32 %v201_v57, 0.0 }
  0xdf   :  { %484 = vmatmul.mubr.f32.vlgmr.msra.gmra.mrb[2].mxu0 %v202_v58 }
 0x1b2   :  { %v292_v0 = vpop.f32.mrb[2].mxu0 }
 0x1b3   :  { %v293_v1 = vadd.f32 %v401_v63, %v292_v0  ;;  %v485_v2 = vpop.f32.mrb[3].mxu0 }
 0x1b5   :  { %v296_v3 = vmax.f32 %v293_v1, 0.0 }
 0x1b7   :  { %519 = vmatmul.mubr.f32.vlgmr.msra.gmra.mrb[2].mxu1 %v296_v3 }
 0x28a   :  { %v386_v5 = vpop.f32.mrb[2].mxu1 }
 0x28b   :  { %v387_v6 = vadd.f32 %v402_v4, %v386_v5  ;;  %v520_v7 = vpop.f32.mrb[3].mxu1 }
 0x28d   :  { %391 = vst.msk [vmem:[%s775_s9] sm:$0xff] %vm390_vm5, %v387_v6 }

</bundles_post_ra>
